<compile_context>
chip_gen: v5e
topology: v5e:2x2
jax: 0.10.0
libtpu: 0.0.40
codegen_flags: <defaults>
</compile_context>

<pallas_src>
import functools
import math

import jax
import jax.numpy as jnp
import numpy as np
from jax.experimental import pallas as pl
from jax.experimental.pallas import tpu as pltpu


def _sembed_kernel(x_ref, wt_ref, b_ref, o_ref, *, scale):
    # x_ref : (tm, dim)        streamed token rows
    # wt_ref: (dim, d_model)   pre-transposed Linear weight (VMEM-resident)
    # b_ref : (1, d_model)     bias (f32)
    # o_ref : (tm, d_model)
    acc = jnp.dot(x_ref[...], wt_ref[...], preferred_element_type=jnp.float32)
    acc = (acc + b_ref[...]) * scale          # bias then sqrt(d_model), as in PyTorch
    o_ref[...] = acc.astype(o_ref.dtype)


def _round_up(a, b):
    return ((a + b - 1) // b) * b


def prepare_sembeddings_params(weight, bias, compute_dtype=None):
    """One-time parameter prep (hoists the transpose out of the call path).

    weight: (d_model, dim) in PyTorch nn.Linear layout; bias: (d_model,).
    Returns (wt, b2d) with wt: (dim, d_model), b2d: (1, d_model) f32.
    """
    wt = jnp.asarray(weight).T
    if compute_dtype is not None:
        wt = wt.astype(compute_dtype)
    b2d = jnp.asarray(bias, jnp.float32).reshape(1, -1)
    return wt, b2d


def sembeddings_forward(x, wt, b2d, *, tm=256, compute_dtype=None):
    """y = (x @ wt + b) * sqrt(d_model).

    x   : (..., dim)
    wt  : (dim, d_model)  pre-transposed weight from prepare_sembeddings_params
    b2d : (1, d_model)    f32 bias
    tm  : token-row tile (128-256 on v5e, 256-512 on v6e/v7x).
    compute_dtype: optionally cast x / wt (e.g. jnp.bfloat16 on v6e/v7x);
                   accumulation stays f32.
    """
    dim, d_model = wt.shape
    lead = x.shape[:-1]
    M = int(np.prod(lead)) if lead else 1
    out_dtype = x.dtype

    x2d = x.reshape(M, dim)
    if compute_dtype is not None:
        x2d = x2d.astype(compute_dtype)
        wt = wt.astype(compute_dtype)

    # Row tile: multiple of 8 (sublane), capped for tiny inputs; pad the token
    # axis so the grid divides evenly (handles ragged last tile).
    tm_eff = min(tm, _round_up(M, 8))
    m_pad = _round_up(M, tm_eff)
    if m_pad != M:
        x2d = jnp.pad(x2d, ((0, m_pad - M), (0, 0)))

    grid = (m_pad // tm_eff,)

    x_bytes = m_pad * dim * jnp.dtype(x2d.dtype).itemsize
    w_bytes = dim * d_model * jnp.dtype(wt.dtype).itemsize
    o_bytes = m_pad * d_model * jnp.dtype(out_dtype).itemsize
    cost = pl.CostEstimate(
        flops=2 * m_pad * dim * d_model,
        transcendentals=0,
        bytes_accessed=x_bytes + w_bytes + d_model * 4 + o_bytes,
    )

    kernel = functools.partial(_sembed_kernel, scale=float(math.sqrt(d_model)))

    out2d = pl.pallas_call(
        kernel,
        out_shape=jax.ShapeDtypeStruct((m_pad, d_model), out_dtype),
        grid_spec=pltpu.PrefetchScalarGridSpec(
            num_scalar_prefetch=0,
            grid=grid,
            in_specs=[
                pl.BlockSpec((tm_eff, dim), lambda i: (i, 0)),    # x rows (streamed)
                pl.BlockSpec((dim, d_model), lambda i: (0, 0)),   # weight (resident)
                pl.BlockSpec((1, d_model), lambda i: (0, 0)),     # bias (resident)
            ],
            out_specs=pl.BlockSpec((tm_eff, d_model), lambda i: (i, 0)),
        ),
        compiler_params=pltpu.CompilerParams(
            dimension_semantics=("parallel",),   # megacore-shardable token axis
        ),
        cost_estimate=cost,
    )(x2d, wt, b2d)

    if m_pad != M:
        out2d = out2d[:M]
    return out2d.reshape(*lead, d_model)


if __name__ == "__main__":
    # Small shapes consistent with the module: (batch, seq, dim) -> (batch, seq, d_model).
    # d_model chosen as a 128-multiple so output stores are lane-dense.
    B, S, dim, d_model = 2, 8, 32, 128

    key = jax.random.PRNGKey(0)
    kx, kw, kb = jax.random.split(key, 3)

    x = jax.random.normal(kx, (B, S, dim), dtype=jnp.float32)
    # nn.Linear layout: weight (out=d_model, in=dim), bias (d_model,)
    weight = jax.random.normal(kw, (d_model, dim), dtype=jnp.float32) * 0.05
    bias = jax.random.normal(kb, (d_model,), dtype=jnp.float32) * 0.05

    wt, b2d = prepare_sembeddings_params(weight, bias)   # transpose hoisted once
    out = sembeddings_forward(x, wt, b2d, tm=256)
    out = jax.block_until_ready(out)

    # Pure-JAX reference: SEmbeddings.forward == (lut(x)) * sqrt(d_model)
    ref = (x @ weight.T + bias) * math.sqrt(d_model)
    assert out.shape == (B, S, d_model)
    assert jnp.allclose(out, ref, atol=1e-4, rtol=1e-4), float(
        jnp.max(jnp.abs(out - ref)))

    print("KERNEL_OK")
</pallas_src>

<mosaic_0001>
module attributes {stable_mosaic.version = 11 : i64} {
  func.func @_sembed_kernel(%arg0: i32, %arg1: memref<16x32xf32, #tpu.memory_space<vmem>>, %arg2: memref<32x128xf32, #tpu.memory_space<vmem>>, %arg3: memref<1x128xf32, #tpu.memory_space<vmem>>, %arg4: memref<16x128xf32, #tpu.memory_space<vmem>>) attributes {dimension_semantics = [#tpu.dimension_semantics<parallel>], iteration_bounds = array<i64: 1>, scalar_prefetch = 0 : i64, scratch_operands = 0 : i64, tpu.core_type = #tpu.core_type<tc>, window_params = [{transform_indices = @transform_0, window_bounds = array<i64: 16, 32>}, {pipeline_mode = #tpu.pipeline_mode<synchronous>, transform_indices = @transform_1, window_bounds = array<i64: 32, 128>}, {pipeline_mode = #tpu.pipeline_mode<synchronous>, transform_indices = @transform_2, window_bounds = array<i64: 1, 128>}, {transform_indices = @transform_3, window_bounds = array<i64: 16, 128>}]} {
    %c0 = arith.constant 0 : index
    %c0_0 = arith.constant 0 : index
    %0 = vector.load %arg1[%c0, %c0_0] : memref<16x32xf32, #tpu.memory_space<vmem>>, vector<16x32xf32>
    %c0_1 = arith.constant 0 : index
    %c0_2 = arith.constant 0 : index
    %1 = vector.load %arg2[%c0_1, %c0_2] : memref<32x128xf32, #tpu.memory_space<vmem>>, vector<32x128xf32>
    %cst = arith.constant dense<0.000000e+00> : vector<16x128xf32>
    %2 = tpu.matmul %0, %1, %cst {dimension_numbers = #tpu.dot_dimension_numbers<[1], [0], [0], [1], [0, 0, 1, 1], [], []>} : vector<16x32xf32>, vector<32x128xf32>, vector<16x128xf32> -> vector<16x128xf32>
    %c0_3 = arith.constant 0 : index
    %c0_4 = arith.constant 0 : index
    %3 = vector.load %arg3[%c0_3, %c0_4] : memref<1x128xf32, #tpu.memory_space<vmem>>, vector<1x128xf32>
    %4 = vector.broadcast %3 : vector<1x128xf32> to vector<16x128xf32>
    %5 = arith.addf %2, %4 : vector<16x128xf32>
    %cst_5 = arith.constant 11.3137083 : f32
    %6 = vector.broadcast %cst_5 : f32 to vector<16x128xf32>
    %7 = arith.mulf %5, %6 : vector<16x128xf32>
    %c0_6 = arith.constant 0 : index
    %c0_7 = arith.constant 0 : index
    %8 = vector.load %arg4[%c0_6, %c0_7] : memref<16x128xf32, #tpu.memory_space<vmem>>, vector<16x128xf32>
    tpu.vector_store %arg4[%c0_6, %c0_7], %7 {strides = array<i32>} : memref<16x128xf32, #tpu.memory_space<vmem>>, vector<16x128xf32>,
    return
  }
  func.func @transform_0(%arg0: i32) -> (i32, i32) {
    %c0_i32 = arith.constant 0 : i32
    %c0_i32_0 = arith.constant 0 : i32
    return %arg0, %c0_i32 : i32, i32
  }
  func.func @transform_1(%arg0: i32) -> (i32, i32) {
    %c0_i32 = arith.constant 0 : i32
    %c0_i32_0 = arith.constant 0 : i32
    %c0_i32_1 = arith.constant 0 : i32
    return %c0_i32, %c0_i32_0 : i32, i32
  }
  func.func @transform_2(%arg0: i32) -> (i32, i32) {
    %c0_i32 = arith.constant 0 : i32
    %c0_i32_0 = arith.constant 0 : i32
    %c0_i32_1 = arith.constant 0 : i32
    return %c0_i32, %c0_i32_0 : i32, i32
  }
  func.func @transform_3(%arg0: i32) -> (i32, i32) {
    %c0_i32 = arith.constant 0 : i32
    %c0_i32_0 = arith.constant 0 : i32
    return %arg0, %c0_i32 : i32, i32
  }
}

</mosaic_0001>

<bundles_post_ra>
// kernel: tpu_custom_call.1
= control target key start
LH: loop header
LB: loop body
LE: loop exit
PB: predicated region body
PF: predicated region fallthrough
CT: control target
= control target key end

     0   :  { %8 = vsyncpa [#allocation3], 0  ;;  %s247_s0 = inlined_call_operand.hbm [shape: f32[16,32], index: 0, kind: input, shape index: {}]   ;;  %s248_s1 = inlined_call_operand.hbm [shape: f32[32,128], index: 1, kind: input, shape index: {}]   ;;  %s249_s2 = inlined_call_operand.vmem [shape: f32[1,128], index: 2, kind: input, shape index: {}]   ;;  %s250_s3 = inlined_call_operand.hbm [shape: f32[16,128], index: 3, kind: output, shape index: {}]  }
   0x1   :  { %9 = vsyncpa [#allocation6], 0 }
   0x2   :  { %10 = vsyncpa [#allocation4], 0  ;;  %s15_s14 = sshll.u32 %s247_s0, 4  ;;  %s201_s15 = smov [#allocation2]   ;;  %s16_s14 = int_to_ptr.hbm [resolvable:$true] %s15_s14 }
   0x3   :  { %s17_s16 = sshll.u32 %s201_s15, 4  ;;  %s28_s19 = sshll.u32 %s248_s1, 4  ;;  %s18_s16 = int_to_ptr.vmem [resolvable:$true] %s17_s16  ;;  %s29_s19 = int_to_ptr.hbm [resolvable:$true] %s28_s19 }
   0x4   :  { %s202_s20 = smov 128   ;;  %s203_s21 = smov 8  }
   0x5   :  { %23 = dma.hbm_to_vmem [thread:$0]  %s16_s14, 256, %s18_s16, [#allocation3], %s202_s20, %s202_s20, %s203_s21  }
   0x6   :  { %s204_s22 = smov [#allocation5]  }
   0x7   :  { %s30_s23 = sshll.u32 %s204_s22, 4  ;;  %s31_s23 = int_to_ptr.vmem [resolvable:$true] %s30_s23 }
   0x8   :  { %36 = dma.hbm_to_vmem [thread:$0]  %s29_s19, 512, %s31_s23, [#allocation6], %s202_s20, %s202_s20, %s203_s21  }
   0x9   :  { %195 = dma.done.wait [#allocation3], 256  }
   0xa   :  { %196 = vsyncadd [#allocation3], 4294967040 }
   0xb   :  { %197 = dma.done.wait [#allocation6], 512  }
   0xc   :  { %198 = vsyncadd [#allocation6], 4294966784  ;;  %v52_v0 = vld [vmem:[#allocation5 + $0x18] sm:$0xff]  ;;  %v51_v1 = vld [vmem:[#allocation5 + $0x10] sm:$0xff]  ;;  %vm57_vm0 = vcmask 261120   ;;  %s205_s24 = smov [#allocation7]  }
   0xd   :  { %76 = vmatpush.msra.mxu0 %v52_v0  ;;  %113 = vmatpush.msra.mxu1 %v52_v0  ;;  %v50_v2 = vld [vmem:[#allocation5 + $0x8] sm:$0xff]  ;;  %v49_v3 = vld [vmem:[#allocation5] sm:$0xff]  ;;  %v47_v4 = vld [vmem:[#allocation2] sm:$0xff]  ;;  %s95_s25 = sshll.u32 %s205_s24, 4  ;;  %s97_s28 = sshll.u32 %s250_s3, 4  ;;  %s96_s25 = int_to_ptr.vmem [resolvable:$true] %s95_s25  ;;  %s98_s28 = int_to_ptr.hbm [resolvable:$true] %s97_s28 }
   0xe   :  { %v48_v5 = vld [vmem:[#allocation2 + $0x8] sm:$0xff]  ;;  %v122_v6 = vld [vmem:[%s249_s2] ss:$0 sm:$0xff] }
   0xf   :  { %77 = vmatpush.msra.mxu0 %v51_v1  ;;  %114 = vmatpush.msra.mxu1 %v51_v1 }
  0x11   :  { %78 = vmatpush.msra.mxu0 %v50_v2  ;;  %115 = vmatpush.msra.mxu1 %v50_v2 }
  0x13   :  { %79 = vmatpush.msra.mxu0 %v49_v3  ;;  %116 = vmatpush.msra.mxu1 %v49_v3 }
  0x14   :  { %111 = vmatmul.msk.f32.vlgmr.msra.gmra.mxu0 %vm57_vm0, %v47_v4  ;;  %112 = vmatmul.msk.f32.vlgmr.msra.gmra.mxu1 %vm57_vm0, %v48_v5 }
  0x91   :  { %v81_v7 = vpop.f32.mrf.mxu0  ;;  %v84_v8 = vpop.f32.mrf.mxu1 }
  0x92   :  { %v82_v9 = vadd.f32 %v122_v6, %v81_v7  ;;  %v85_v10 = vadd.f32 %v122_v6, %v84_v8 }
  0x94   :  { %v87_v11 = vmul.f32 11.313708, %v82_v9  ;;  %v88_v12 = vmul.f32 11.313708, %v85_v10 }
  0x96   :  { %89 = vst [vmem:[#allocation7] sm:$0xff] %v87_v11 }
  0x97   :  { %90 = vst [vmem:[#allocation7 + $0x8] sm:$0xff] %v88_v12 }
  0x98   :  { %103 = dma.vmem_to_hbm [thread:$0]  %s96_s25, 256, %s98_s28, [#allocation4], %s202_s20, %s202_s20, %s203_s21  }
  0x99   :  { %199 = dma.done.wait [#allocation4], 256  }
  0x9a   :  { %200 = vsyncadd [#allocation4], 4294967040 }
  0x9b   :  { %108 = vsyncpa [#allocation3], 1 }
  0x9c   :  { %109 = vsyncpa [#allocation6], 1 }
  0x9d   :  { %110 = vsyncpa [#allocation4], 1 }

</bundles_post_ra>
